<compile_context>
chip_gen: v6e
topology: v6e:2x2x1
jax: 0.10.0
libtpu: 0.0.40
codegen_flags: <defaults>
</compile_context>

<pallas_src>
from functools import partial

import numpy as np
import jax
import jax.numpy as jnp
from jax.experimental import pallas as pl
from jax.experimental.pallas import tpu as pltpu


def _round_up(x, m):
    return ((x + m - 1) // m) * m


@partial(jax.jit, static_argnames=("tile_n", "num_shards"))
def cluster_loss_boost(c, pseudo_label, *, tile_n=None, num_shards=None):
    """Pallas implementation of ClusterLossBoost.forward(c, pseudo_label).

    c:            [N, K] logits (f32 or bf16; upcast to f32 inside the kernel)
    pseudo_label: [N] int labels, -1 == unlabeled
    """
    n, k = c.shape

    if tile_n is None:
        tile_n = min(8192, _round_up(n, 8))
    tile_n = max(8, min(_round_up(tile_n, 8), _round_up(n, 8)))

    n_tiles = -(-n // tile_n)
    if num_shards is None:
        # Leading "parallel" axis: sharded across TensorCores on multi-core chips (v7x).
        num_shards = 2 if n_tiles >= 2 else 1
    num_shards = max(1, min(num_shards, n_tiles))
    tiles_per_shard = -(-n_tiles // num_shards)
    last_tile = n_tiles - 1

    labels2d = pseudo_label.astype(jnp.int32).reshape(n, 1)

    def kernel(c_ref, lbl_ref, counts_ref, nllsum_ref):
        i = pl.program_id(1)

        @pl.when(i == 0)
        def _init():
            counts_ref[...] = jnp.zeros_like(counts_ref)
            nllsum_ref[...] = jnp.zeros_like(nllsum_ref)

        # Global (unclamped) row ids of this tile: rows >= n are masked.  Covers both the
        # ragged tail of the last real tile and whole tiles past the end that a shard may
        # be assigned when n_tiles does not divide evenly by num_shards.
        gtile = pl.program_id(0) * tiles_per_shard + i
        rows = jax.lax.broadcasted_iota(jnp.int32, (tile_n, 1), 0) + gtile * tile_n
        valid = rows < n                                                 # [T, 1] bool

        # Zero masked rows so garbage (possibly NaN/Inf) in the VMEM tail cannot reach
        # the accumulators through 0 * NaN.
        logits = jnp.where(valid, c_ref[...].astype(jnp.float32), 0.0)   # [T, K] f32

        cls = jax.lax.broadcasted_iota(jnp.int32, (tile_n, k), 1)
        onehot = ((cls == lbl_ref[...]) & valid).astype(jnp.float32)     # [T, K]

        # Row-wise log-softmax pieces (lane reductions over the K classes).
        m = jnp.max(logits, axis=-1, keepdims=True)                      # [T, 1]
        z = logits - m
        lse = jnp.log(jnp.sum(jnp.exp(z), axis=-1, keepdims=True))       # [T, 1]

        # Per-class partials for this tile, accumulated into the shard's resident block.
        counts_ref[0:1, :] += jnp.sum(onehot, axis=0, keepdims=True)
        nllsum_ref[0:1, :] += jnp.sum(onehot * (lse - z), axis=0, keepdims=True)

    def in_map(s, i):
        # Clamp so the DMA never starts past the array; logically-OOB tiles are fully
        # masked in the kernel regardless of the (duplicate) data the DMA brings in.
        return (jnp.minimum(s * tiles_per_shard + i, last_tile), 0)

    counts_parts, nllsum_parts = pl.pallas_call(
        kernel,
        out_shape=(
            jax.ShapeDtypeStruct((num_shards * 8, k), jnp.float32),
            jax.ShapeDtypeStruct((num_shards * 8, k), jnp.float32),
        ),
        grid_spec=pltpu.PrefetchScalarGridSpec(
            num_scalar_prefetch=0,
            grid=(num_shards, tiles_per_shard),          # (shard, sample-tile)
            in_specs=[
                pl.BlockSpec((tile_n, k), in_map),       # logits, native [N, K] layout
                pl.BlockSpec((tile_n, 1), in_map),       # labels
            ],
            out_specs=(
                pl.BlockSpec((8, k), lambda s, i: (s, 0)),   # per-shard class counts
                pl.BlockSpec((8, k), lambda s, i: (s, 0)),   # per-shard class NLL sums
            ),
        ),
        compiler_params=pltpu.CompilerParams(
            dimension_semantics=("parallel", "arbitrary"),
        ),
    )(c, labels2d)

    # Tiny O(K) epilogue: combine shard partials, derive class weights, emit the scalar.
    counts = jnp.sum(counts_parts, axis=0)                  # [K]
    nll_sums = jnp.sum(nllsum_parts, axis=0)                # [K]
    n_valid = jnp.sum(counts)
    weight = jnp.where(counts > 0.0, n_valid / jnp.maximum(counts, 1.0), 1.0)
    num = jnp.sum(weight * nll_sums)
    den = jnp.sum(weight * counts)
    # CrossEntropyLoss(weight, reduction='mean') normalizes by the sum of sample weights;
    # with no valid labels the torch module returns 0.0.
    return jnp.where(den > 0.0, num / jnp.where(den > 0.0, den, 1.0), 0.0)


def numpy_reference(c, y, cluster_num):
    c = np.asarray(c, np.float32)
    y = np.asarray(y)
    valid = y != -1
    yv = y[valid]
    if yv.size == 0:
        return np.float32(0.0)
    idx, counts = np.unique(yv, return_counts=True)
    freq = yv.shape[0] / counts.astype(np.float32)
    weight = np.ones(cluster_num, np.float32)
    weight[idx] = freq
    cv = c[valid]
    m = cv.max(-1, keepdims=True)
    logp = cv - m - np.log(np.exp(cv - m).sum(-1, keepdims=True))
    nll = -logp[np.arange(cv.shape[0]), yv]
    w = weight[yv]
    return (w * nll).sum() / w.sum()


if __name__ == "__main__":
    cluster_num = 10

    key = jax.random.PRNGKey(0)
    k1, k2, k3, k4 = jax.random.split(key, 4)

    # Case 1: small batch, single tile / single shard.
    N1 = 64
    c1 = jax.random.normal(k1, (N1, cluster_num), dtype=jnp.float32)
    y1 = jax.random.randint(k2, (N1,), -1, cluster_num, dtype=jnp.int32)
    loss1 = jax.block_until_ready(cluster_loss_boost(c1, y1))
    ref1 = numpy_reference(c1, y1, cluster_num)
    np.testing.assert_allclose(np.asarray(loss1), ref1, rtol=1e-4, atol=1e-5)

    # Case 2: multi-tile, 2 shards, ragged last tile and one fully-out-of-range tile
    # (exercises the row mask and the clamped index_map).
    N2 = 300
    c2 = jax.random.normal(k3, (N2, cluster_num), dtype=jnp.float32)
    y2 = jax.random.randint(k4, (N2,), -1, cluster_num, dtype=jnp.int32)
    loss2 = jax.block_until_ready(cluster_loss_boost(c2, y2, tile_n=128, num_shards=2))
    ref2 = numpy_reference(c2, y2, cluster_num)
    np.testing.assert_allclose(np.asarray(loss2), ref2, rtol=1e-4, atol=1e-5)

    # Case 3: all unlabeled -> 0.0 (den == 0 path).
    loss3 = jax.block_until_ready(
        cluster_loss_boost(c1, jnp.full((N1,), -1, dtype=jnp.int32)))
    np.testing.assert_allclose(np.asarray(loss3), 0.0, atol=1e-6)

    print("KERNEL_OK")
</pallas_src>

<mosaic_0001>
module attributes {stable_mosaic.version = 11 : i64} {
  func.func @kernel(%arg0: i32, %arg1: i32, %arg2: memref<64x10xf32, #tpu.memory_space<vmem>>, %arg3: memref<64x1xi32, #tpu.memory_space<vmem>>, %arg4: memref<8x10xf32, #tpu.memory_space<vmem>>, %arg5: memref<8x10xf32, #tpu.memory_space<vmem>>) attributes {dimension_semantics = [#tpu.dimension_semantics<parallel>, #tpu.dimension_semantics<arbitrary>], iteration_bounds = array<i64: 1, 1>, scalar_prefetch = 0 : i64, scratch_operands = 0 : i64, tpu.core_type = #tpu.core_type<tc>, window_params = [{transform_indices = @transform_0, window_bounds = array<i64: 64, 10>}, {transform_indices = @transform_1, window_bounds = array<i64: 64, 1>}, {transform_indices = @transform_2, window_bounds = array<i64: 8, 10>}, {transform_indices = @transform_3, window_bounds = array<i64: 8, 10>}]} {
    %c0_i32 = arith.constant 0 : i32
    %0 = arith.cmpi eq, %arg1, %c0_i32 : i32
    %1 = arith.extui %0 : i1 to i32
    %c0_i32_0 = arith.constant 0 : i32
    %2 = arith.cmpi ne, %1, %c0_i32_0 : i32
    scf.if %2 {
      %cst_17 = arith.constant 0.000000e+00 : f32
      %45 = vector.broadcast %cst_17 : f32 to vector<8x10xf32>
      %c0_18 = arith.constant 0 : index
      %c0_19 = arith.constant 0 : index
      %46 = vector.load %arg4[%c0_18, %c0_19] : memref<8x10xf32, #tpu.memory_space<vmem>>, vector<8x10xf32>
      tpu.vector_store %arg4[%c0_18, %c0_19], %45 {strides = array<i32>} : memref<8x10xf32, #tpu.memory_space<vmem>>, vector<8x10xf32>,
      %cst_20 = arith.constant 0.000000e+00 : f32
      %47 = vector.broadcast %cst_20 : f32 to vector<8x10xf32>
      %c0_21 = arith.constant 0 : index
      %c0_22 = arith.constant 0 : index
      %48 = vector.load %arg5[%c0_21, %c0_22] : memref<8x10xf32, #tpu.memory_space<vmem>>, vector<8x10xf32>
      tpu.vector_store %arg5[%c0_21, %c0_22], %47 {strides = array<i32>} : memref<8x10xf32, #tpu.memory_space<vmem>>, vector<8x10xf32>,
    } else {
    }
    %c1_i32 = arith.constant 1 : i32
    %3 = arith.muli %arg0, %c1_i32 : i32
    %4 = arith.addi %3, %arg1 : i32
    %5 = tpu.iota {dimensions = array<i32: 0>} : vector<64x1xi32>
    %c64_i32 = arith.constant 64 : i32
    %6 = arith.muli %4, %c64_i32 : i32
    %7 = vector.broadcast %6 : i32 to vector<64x1xi32>
    %8 = arith.addi %5, %7 : vector<64x1xi32>
    %c64_i32_1 = arith.constant 64 : i32
    %9 = vector.broadcast %c64_i32_1 : i32 to vector<64x1xi32>
    %10 = arith.cmpi slt, %8, %9 : vector<64x1xi32>
    %c0 = arith.constant 0 : index
    %c0_2 = arith.constant 0 : index
    %11 = vector.load %arg2[%c0, %c0_2] : memref<64x10xf32, #tpu.memory_space<vmem>>, vector<64x10xf32>
    %cst = arith.constant 0.000000e+00 : f32
    %12 = vector.shape_cast %10 : vector<64x1xi1> to vector<64x1xi1>
    %13 = vector.broadcast %12 : vector<64x1xi1> to vector<64x10xi1>
    %14 = vector.broadcast %cst : f32 to vector<64x10xf32>
    %15 = arith.select %13, %11, %14 : vector<64x10xi1>, vector<64x10xf32>
    %16 = tpu.iota {dimensions = array<i32: 1>} : vector<64x10xi32>
    %c0_3 = arith.constant 0 : index
    %c0_4 = arith.constant 0 : index
    %17 = vector.load %arg3[%c0_3, %c0_4] : memref<64x1xi32, #tpu.memory_space<vmem>>, vector<64x1xi32>
    %18 = vector.broadcast %17 : vector<64x1xi32> to vector<64x10xi32>
    %19 = arith.cmpi eq, %16, %18 : vector<64x10xi32>
    %20 = vector.broadcast %10 : vector<64x1xi1> to vector<64x10xi1>
    %21 = arith.andi %19, %20 : vector<64x10xi1>
    %22 = arith.extui %21 : vector<64x10xi1> to vector<64x10xi32>
    %23 = arith.sitofp %22 : vector<64x10xi32> to vector<64x10xf32>
    %cst_5 = arith.constant dense<0xFF800000> : vector<64xf32>
    %24 = vector.multi_reduction <maximumf>, %15, %cst_5 [1] : vector<64x10xf32> to vector<64xf32>
    %25 = vector.shape_cast %24 : vector<64xf32> to vector<64x1xf32>
    %26 = vector.broadcast %25 : vector<64x1xf32> to vector<64x10xf32>
    %27 = arith.subf %15, %26 : vector<64x10xf32>
    %28 = math.exp %27 : vector<64x10xf32>
    %cst_6 = arith.constant dense<0.000000e+00> : vector<64xf32>
    %29 = vector.multi_reduction <add>, %28, %cst_6 [1] : vector<64x10xf32> to vector<64xf32>
    %30 = vector.shape_cast %29 : vector<64xf32> to vector<64x1xf32>
    %31 = math.log %30 : vector<64x1xf32>
    %c0_7 = arith.constant 0 : index
    %c0_8 = arith.constant 0 : index
    %32 = vector.load %arg4[%c0_7, %c0_8] : memref<8x10xf32, #tpu.memory_space<vmem>>, vector<1x10xf32>
    %cst_9 = arith.constant dense<0.000000e+00> : vector<10xf32>
    %33 = vector.multi_reduction <add>, %23, %cst_9 [0] : vector<64x10xf32> to vector<10xf32>
    %34 = vector.shape_cast %33 : vector<10xf32> to vector<1x10xf32>
    %35 = arith.addf %32, %34 : vector<1x10xf32>
    %c0_10 = arith.constant 0 : index
    %c0_11 = arith.constant 0 : index
    %36 = vector.load %arg4[%c0_10, %c0_11] : memref<8x10xf32, #tpu.memory_space<vmem>>, vector<1x10xf32>
    tpu.vector_store %arg4[%c0_10, %c0_11], %35 {strides = array<i32>} : memref<8x10xf32, #tpu.memory_space<vmem>>, vector<1x10xf32>,
    %c0_12 = arith.constant 0 : index
    %c0_13 = arith.constant 0 : index
    %37 = vector.load %arg5[%c0_12, %c0_13] : memref<8x10xf32, #tpu.memory_space<vmem>>, vector<1x10xf32>
    %38 = vector.broadcast %31 : vector<64x1xf32> to vector<64x10xf32>
    %39 = arith.subf %38, %27 : vector<64x10xf32>
    %40 = arith.mulf %23, %39 : vector<64x10xf32>
    %cst_14 = arith.constant dense<0.000000e+00> : vector<10xf32>
    %41 = vector.multi_reduction <add>, %40, %cst_14 [0] : vector<64x10xf32> to vector<10xf32>
    %42 = vector.shape_cast %41 : vector<10xf32> to vector<1x10xf32>
    %43 = arith.addf %37, %42 : vector<1x10xf32>
    %c0_15 = arith.constant 0 : index
    %c0_16 = arith.constant 0 : index
    %44 = vector.load %arg5[%c0_15, %c0_16] : memref<8x10xf32, #tpu.memory_space<vmem>>, vector<1x10xf32>
    tpu.vector_store %arg5[%c0_15, %c0_16], %43 {strides = array<i32>} : memref<8x10xf32, #tpu.memory_space<vmem>>, vector<1x10xf32>,
    return
  }
  func.func @transform_0(%arg0: i32, %arg1: i32) -> (i32, i32) {
    %c1_i32 = arith.constant 1 : i32
    %0 = arith.muli %arg0, %c1_i32 : i32
    %1 = arith.addi %0, %arg1 : i32
    %c0_i32 = arith.constant 0 : i32
    %2 = arith.minsi %1, %c0_i32 : i32
    %c0_i32_0 = arith.constant 0 : i32
    %c0_i32_1 = arith.constant 0 : i32
    return %2, %c0_i32_0 : i32, i32
  }
  func.func @transform_1(%arg0: i32, %arg1: i32) -> (i32, i32) {
    %c1_i32 = arith.constant 1 : i32
    %0 = arith.muli %arg0, %c1_i32 : i32
    %1 = arith.addi %0, %arg1 : i32
    %c0_i32 = arith.constant 0 : i32
    %2 = arith.minsi %1, %c0_i32 : i32
    %c0_i32_0 = arith.constant 0 : i32
    %c0_i32_1 = arith.constant 0 : i32
    return %2, %c0_i32_0 : i32, i32
  }
  func.func @transform_2(%arg0: i32, %arg1: i32) -> (i32, i32) {
    %c0_i32 = arith.constant 0 : i32
    %c0_i32_0 = arith.constant 0 : i32
    return %arg0, %c0_i32 : i32, i32
  }
  func.func @transform_3(%arg0: i32, %arg1: i32) -> (i32, i32) {
    %c0_i32 = arith.constant 0 : i32
    %c0_i32_0 = arith.constant 0 : i32
    return %arg0, %c0_i32 : i32, i32
  }
}

</mosaic_0001>

<bundles_post_ra>
// kernel: cluster_loss_boost.1
= control target key start
LH: loop header
LB: loop body
LE: loop exit
PB: predicated region body
PF: predicated region fallthrough
CT: control target
= control target key end

     0   :  { %vm81_vm0 = vcmask 80896   ;;  %v428_v16 = vmov 0   ;;  %vm322_vm9 = vcmask 73728   ;;  %s606_s0 = inlined_call_operand.vmem [shape: f32[64,10], index: 0, kind: input, shape index: {}]   ;;  %s607_s1 = inlined_call_operand.vmem [shape: s32[64,1], index: 1, kind: input, shape index: {}]   ;;  %s608_s2 = inlined_call_operand.vmem [shape: f32[8,10], index: 2, kind: output, shape index: {0}]   ;;  %s609_s3 = inlined_call_operand.vmem [shape: f32[8,10], index: 3, kind: output, shape index: {1}]  }
   0x1   :  { %v112_v0 = vld [vmem:[%s606_s0] sm:$0xff]  ;;  %v114_v1 = vld [vmem:[%s606_s0 + $0x10] sm:$0xff]  ;;  %v113_v2 = vld [vmem:[%s606_s0 + $0x8] sm:$0xff]  ;;  %395 = vset.pattern.permute.xlu1 %v428_v16  ;;  %394 = vset.pattern.permute.xlu0 %v428_v16 }
   0x2   :  { %v211_v3 = vsel %vm81_vm0, %v112_v0, -inf  ;;  %v217_v4 = vsel %vm81_vm0, %v114_v1, -inf  ;;  %v115_v5 = vld [vmem:[%s606_s0 + $0x18] sm:$0xff]  ;;  %v214_v6 = vsel %vm81_vm0, %v113_v2, -inf  ;;  %v116_v8 = vld [vmem:[%s606_s0 + $0x20] sm:$0xff]  ;;  %v117_v9 = vld [vmem:[%s606_s0 + $0x28] sm:$0xff] }
   0x3   :  { %212 = vmax.xlane.f32.xlu0 %v211_v3  ;;  %218 = vmax.xlane.f32.xlu1 %v217_v4  ;;  %v220_v7 = vsel %vm81_vm0, %v115_v5, -inf  ;;  %v223_v10 = vsel %vm81_vm0, %v116_v8, -inf  ;;  %v226_v11 = vsel %vm81_vm0, %v117_v9, -inf  ;;  %v118_v12 = vld [vmem:[%s606_s0 + $0x30] sm:$0xff]  ;;  %v480_v13 = vld [vmem:[%s606_s0 + $0x38] sm:$0xff]  ;;  %v147_v52 = vld [vmem:[%s607_s1 + $0x8] sm:$0xff] }
   0x4   :  { %v229_v14 = vsel %vm81_vm0, %v118_v12, -inf  ;;  %v232_v15 = vsel %vm81_vm0, %v480_v13, -inf  ;;  %v148_v53 = vld [vmem:[%s607_s1 + $0x10] sm:$0xff]  ;;  %v146_v54 = vld [vmem:[%s607_s1] sm:$0xff]  ;;  %v149_v55 = vld [vmem:[%s607_s1 + $0x18] sm:$0xff] }
   0x5   :  { %v150_v56 = vld [vmem:[%s607_s1 + $0x20] sm:$0xff]  ;;  %v151_v57 = vld [vmem:[%s607_s1 + $0x28] sm:$0xff]  ;;  %v152_v58 = vld [vmem:[%s607_s1 + $0x30] sm:$0xff] }
   0x7   :  { %215 = vmax.xlane.f32.xlu0 %v214_v6  ;;  %221 = vmax.xlane.f32.xlu1 %v220_v7 }
   0xb   :  { %224 = vmax.xlane.f32.xlu0 %v223_v10  ;;  %227 = vmax.xlane.f32.xlu1 %v226_v11 }
   0xf   :  { %230 = vmax.xlane.f32.xlu0 %v229_v14  ;;  %233 = vmax.xlane.f32.xlu1 %v232_v15 }
  0x8c   :  { %v213_v17 = vpop.xlane.xlu0 %212  ;;  %v219_v18 = vpop.xlane.xlu1 %218 }
  0x8d   :  { %v485_v19 = vsub.f32 %v112_v0, %v213_v17  ;;  %v487_v20 = vsub.f32 %v114_v1, %v219_v18  ;;  %v153_v0 = vld [vmem:[%s607_s1 + $0x38] sm:$0xff]  ;;  %v429_v1 = vmov 0.0  }
  0x8e   :  { %82 = vst.msk [vmem:[%s608_s2] sm:$0xff] %vm81_vm0, %v429_v1  ;;  %83 = vst.msk [vmem:[%s609_s3] sm:$0xff] %vm81_vm0, %v429_v1 }
  0x8f   :  { %v243_v21 = vmul.f32 1.442695, %v485_v19  ;;  %v247_v22 = vmul.f32 1.442695, %v487_v20 }
  0x90   :  { %v216_v23 = vpop.xlane.xlu0 %215  ;;  %v222_v24 = vpop.xlane.xlu1 %221 }
  0x91   :  { %396 = vpow2.f32 %v243_v21  ;;  %v491_v25 = vsub.f32 %v113_v2, %v216_v23  ;;  %v493_v26 = vsub.f32 %v115_v5, %v222_v24 }
  0x92   :  { %398 = vpow2.f32 %v247_v22 }
  0x93   :  { %v245_v27 = vmul.f32 1.442695, %v491_v25  ;;  %v249_v28 = vmul.f32 1.442695, %v493_v26 }
  0x94   :  { %v225_v29 = vpop.xlane.xlu0 %224  ;;  %v228_v30 = vpop.xlane.xlu1 %227 }
  0x95   :  { %400 = vpow2.f32 %v245_v27  ;;  %v497_v31 = vsub.f32 %v116_v8, %v225_v29  ;;  %v499_v32 = vsub.f32 %v117_v9, %v228_v30 }
  0x96   :  { %402 = vpow2.f32 %v249_v28 }
  0x97   :  { %v251_v33 = vmul.f32 1.442695, %v497_v31  ;;  %v253_v34 = vmul.f32 1.442695, %v499_v32 }
  0x98   :  { %v231_v35 = vpop.xlane.xlu0 %230  ;;  %v234_v59 = vpop.xlane.xlu1 %233 }
  0x99   :  { %404 = vpow2.f32 %v251_v33  ;;  %v503_v36 = vsub.f32 %v118_v12, %v231_v35  ;;  %v535_v60 = vsub.f32 %v480_v13, %v234_v59  ;;  %v144_v12 = vlaneseq }
  0x9a   :  { %406 = vpow2.f32 %v253_v34 }
  0x9b   :  { %v255_v37 = vmul.f32 1.442695, %v503_v36  ;;  %v257_v61 = vmul.f32 1.442695, %v535_v60  ;;  %v552_v14 = vand.u32 127, %v144_v12 }
  0x9d   :  { %408 = vpow2.f32 %v255_v37 }
  0x9e   :  { %v397_v38 = vpop.eup %396  ;;  %410 = vpow2.f32 %v257_v61 }
  0x9f   :  { %v399_v39 = vpop.eup %398  ;;  %v259_v40 = vsel %vm81_vm0, %v397_v38, 0.0 }
  0xa0   :  { %260 = vadd.xlane.f32.xlu0 %v259_v40  ;;  %v265_v41 = vsel %vm81_vm0, %v399_v39, 0.0 }
  0xa2   :  { %v401_v42 = vpop.eup %400 }
  0xa3   :  { %v403_v43 = vpop.eup %402  ;;  %v262_v44 = vsel %vm81_vm0, %v401_v42, 0.0 }
  0xa4   :  { %266 = vadd.xlane.f32.xlu0 %v265_v41  ;;  %263 = vadd.xlane.f32.xlu1 %v262_v44  ;;  %v268_v45 = vsel %vm81_vm0, %v403_v43, 0.0 }
  0xa6   :  { %v405_v46 = vpop.eup %404 }
  0xa7   :  { %v407_v47 = vpop.eup %406  ;;  %v271_v48 = vsel %vm81_vm0, %v405_v46, 0.0 }
  0xa8   :  { %269 = vadd.xlane.f32.xlu1 %v268_v45  ;;  %272 = vadd.xlane.f32.xlu0 %v271_v48  ;;  %v274_v49 = vsel %vm81_vm0, %v407_v47, 0.0 }
  0xaa   :  { %v409_v50 = vpop.eup %408 }
  0xab   :  { %v277_v51 = vsel %vm81_vm0, %v409_v50, 0.0  ;;  %v411_v62 = vpop.eup %410 }
  0xac   :  { %275 = vadd.xlane.f32.xlu1 %v274_v49  ;;  %278 = vadd.xlane.f32.xlu0 %v277_v51  ;;  %v280_v63 = vsel %vm81_vm0, %v411_v62, 0.0 }
  0xbd   :  { %158 = vperm.xlu1 %395, %v147_v52  }
  0xc1   :  { %161 = vperm.xlu1 %395, %v148_v53  }
  0xc2   :  { %155 = vperm.xlu0 %394, %v146_v54  }
  0xc5   :  { %164 = vperm.xlu1 %395, %v149_v55  }
  0xc9   :  { %167 = vperm.xlu1 %395, %v150_v56  }
  0xcd   :  { %170 = vperm.xlu1 %395, %v151_v57  }
  0xd1   :  { %173 = vperm.xlu1 %395, %v152_v58  }
  0xf5   :  { %281 = vadd.xlane.f32.xlu1 %v280_v63 }
 0x106   :  { %176 = vperm.xlu1 %395, %v153_v0  }
 0x129   :  { %v261_v4 = vpop.xlane.xlu0 %260 }
 0x12d   :  { %v264_v2 = vpop.xlane.xlu1 %263  ;;  %v267_v6 = vpop.xlane.xlu0 %266 }
 0x12e   :  { %412 = vlog2.f32 %v264_v2 }
 0x12f   :  { %414 = vlog2.f32 %v261_v4 }
 0x130   :  { %416 = vlog2.f32 %v267_v6 }
 0x131   :  { %v270_v3 = vpop.xlane.xlu1 %269  ;;  %v273_v8 = vpop.xlane.xlu0 %272 }
 0x132   :  { %418 = vlog2.f32 %v270_v3 }
 0x133   :  { %420 = vlog2.f32 %v273_v8 }
 0x135   :  { %v276_v5 = vpop.xlane.xlu1 %275  ;;  %v279_v10 = vpop.xlane.xlu0 %278 }
 0x136   :  { %422 = vlog2.f32 %v276_v5 }
 0x137   :  { %424 = vlog2.f32 %v279_v10 }
 0x139   :  { %v159_v7 = vpop.permute.xlu1 %158 }
 0x13a   :  { %vm179_vm2 = vcmp.eq.s32.totalorder %v552_v14, %v159_v7 }
 0x13b   :  { %v413_v17 = vpop.eup %412  ;;  %v385_v18 = vsel %vm179_vm2, 1.0, %v429_v1 }
 0x13c   :  { %v415_v23 = vpop.eup %414  ;;  %v286_v24 = vmul.f32 0.6931472, %v413_v17  ;;  %v301_v27 = vsel %vm81_vm0, %v385_v18, 0.0 }
 0x13d   :  { %v162_v9 = vpop.permute.xlu1 %161  ;;  %v156_v13 = vpop.permute.xlu0 %155  ;;  %v284_v30 = vmul.f32 0.6931472, %v415_v23 }
 0x13e   :  { %vm178_vm1 = vcmp.eq.s32.totalorder %v552_v14, %v156_v13  ;;  %vm180_vm3 = vcmp.eq.s32.totalorder %v552_v14, %v162_v9  ;;  %v417_v33 = vpop.eup %416  ;;  %v326_v37 = vsub.f32 %v286_v24, %v491_v25 }
 0x13f   :  { %v384_v16 = vsel %vm178_vm1, 1.0, %v429_v1  ;;  %v386_v28 = vsel %vm180_vm3, 1.0, %v429_v1  ;;  %v419_v39 = vpop.eup %418  ;;  %v288_v42 = vmul.f32 0.6931472, %v417_v33  ;;  %v325_v43 = vsub.f32 %v284_v30, %v485_v19 }
 0x140   :  { %v300_v22 = vsel %vm81_vm0, %v384_v16, 0.0  ;;  %v303_v38 = vsel %vm81_vm0, %v386_v28, 0.0  ;;  %v421_v46 = vpop.eup %420  ;;  %v290_v47 = vmul.f32 0.6931472, %v419_v39  ;;  %v334_v25 = vmul.f32 %v385_v18, %v326_v37 }
 0x141   :  { %v165_v11 = vpop.permute.xlu1 %164  ;;  %v302_v29 = vadd.f32 %v301_v27, %v300_v22  ;;  %v333_v48 = vmul.f32 %v384_v16, %v325_v43  ;;  %v327_v53 = vsub.f32 %v288_v42, %v487_v20  ;;  %v292_v55 = vmul.f32 0.6931472, %v421_v46  ;;  %v324_v46 = vld [vmem:[%s609_s3] sm:$0x1] }
 0x142   :  { %vm181_vm4 = vcmp.eq.s32.totalorder %v552_v14, %v165_v11  ;;  %v342_v57 = vsel %vm81_vm0, %v334_v25, 0.0  ;;  %v328_v59 = vsub.f32 %v290_v47, %v493_v26 }
 0x143   :  { %v387_v34 = vsel %vm181_vm4, 1.0, %v429_v1  ;;  %v304_v40 = vadd.f32 %v303_v38, %v302_v29  ;;  %v423_v54 = vpop.eup %422  ;;  %v341_v58 = vsel %vm81_vm0, %v333_v48, 0.0  ;;  %v335_v3 = vmul.f32 %v386_v28, %v327_v53 }
 0x144   :  { %v305_v44 = vsel %vm81_vm0, %v387_v34, 0.0  ;;  %v425_v62 = vpop.eup %424  ;;  %v294_v2 = vmul.f32 0.6931472, %v423_v54  ;;  %v343_v20 = vadd.f32 %v342_v57, %v341_v58  ;;  %v336_v7 = vmul.f32 %v387_v34, %v328_v59 }
 0x145   :  { %v168_v15 = vpop.permute.xlu1 %167  ;;  %v306_v50 = vadd.f32 %v305_v44, %v304_v40  ;;  %v296_v6 = vmul.f32 0.6931472, %v425_v62  ;;  %v329_v8 = vsub.f32 %v292_v55, %v497_v31  ;;  %v344_v10 = vsel %vm81_vm0, %v335_v3, 0.0 }
 0x146   :  { %vm182_vm5 = vcmp.eq.s32.totalorder %v552_v14, %v168_v15  ;;  %v330_v12 = vsub.f32 %v294_v2, %v499_v32  ;;  %v345_v13 = vadd.f32 %v344_v10, %v343_v20 }
 0x147   :  { %v388_v41 = vsel %vm182_vm5, 1.0, %v429_v1  ;;  %v331_v17 = vsub.f32 %v296_v6, %v503_v36  ;;  %v299_v36 = vld [vmem:[%s608_s2] sm:$0x1] }
 0x148   :  { %v307_v49 = vsel %vm81_vm0, %v388_v41, 0.0  ;;  %v337_v11 = vmul.f32 %v388_v41, %v329_v8 }
 0x149   :  { %v171_v21 = vpop.permute.xlu1 %170  ;;  %v308_v56 = vadd.f32 %v307_v49, %v306_v50 }
 0x14a   :  { %vm183_vm6 = vcmp.eq.s32.totalorder %v552_v14, %v171_v21  ;;  %v348_v18 = vsel %vm81_vm0, %v337_v11, 0.0 }
 0x14b   :  { %v389_v45 = vsel %vm183_vm6, 1.0, %v429_v1 }
 0x14c   :  { %v309_v19 = vsel %vm81_vm0, %v389_v45, 0.0  ;;  %v338_v16 = vmul.f32 %v389_v45, %v330_v12 }
 0x14d   :  { %v174_v35 = vpop.permute.xlu1 %173  ;;  %v310_v63 = vadd.f32 %v309_v19, %v308_v56 }
 0x14e   :  { %vm184_vm7 = vcmp.eq.s32.totalorder %v552_v14, %v174_v35  ;;  %v350_v24 = vsel %vm81_vm0, %v338_v16, 0.0 }
 0x14f   :  { %v390_v51 = vsel %vm184_vm7, 1.0, %v429_v1 }
 0x150   :  { %v311_v61 = vsel %vm81_vm0, %v390_v51, 0.0  ;;  %v339_v21 = vmul.f32 %v390_v51, %v331_v17 }
 0x151   :  { %v312_v4 = vadd.f32 %v311_v61, %v310_v63 }
 0x152   :  { %v352_v32 = vsel %vm81_vm0, %v339_v21, 0.0 }
 0x17e   :  { %v282_v52 = vpop.xlane.xlu1 %281 }
 0x17f   :  { %426 = vlog2.f32 %v282_v52 }
 0x182   :  { %v177_v0 = vpop.permute.xlu1 %176 }
 0x183   :  { %vm185_vm8 = vcmp.eq.s32.totalorder %v552_v14, %v177_v0  ;;  %v346_v14 = vsel %vm81_vm0, %v336_v7, 0.0 }
 0x184   :  { %v391_v5 = vsel %vm185_vm8, 1.0, %v429_v1  ;;  %v347_v22 = vadd.f32 %v346_v14, %v345_v13 }
 0x185   :  { %v313_v9 = vsel %vm81_vm0, %v391_v5, 0.0 }
 0x186   :  { %v314_v26 = vadd.f32 %v313_v9, %v312_v4  ;;  %v349_v28 = vadd.f32 %v348_v18, %v347_v22 }
 0x188   :  { %v315_v15 = vrot.slane %v314_v26, 4  ;;  %v351_v33 = vadd.f32 %v350_v24, %v349_v28 }
 0x18a   :  { %v316_v1 = vadd.f32 %v315_v15, %v314_v26  ;;  %v353_v37 = vadd.f32 %v352_v32, %v351_v33 }
 0x18c   :  { %v427_v31 = vpop.eup %426  ;;  %v317_v23 = vrot.slane %v316_v1, 2 }
 0x18d   :  { %v298_v27 = vmul.f32 0.6931472, %v427_v31 }
 0x18e   :  { %v318_v29 = vadd.f32 %v317_v23, %v316_v1 }
 0x18f   :  { %v332_v30 = vsub.f32 %v298_v27, %v535_v60 }
 0x190   :  { %v319_v34 = vrot.slane %v318_v29, 1 }
 0x191   :  { %v340_v35 = vmul.f32 %v391_v5, %v332_v30 }
 0x192   :  { %v320_v38 = vadd.f32 %v319_v34, %v318_v29 }
 0x193   :  { %v354_v39 = vsel %vm81_vm0, %v340_v35, 0.0 }
 0x194   :  { %v321_v40 = vadd.f32 %v320_v38, %v299_v36  ;;  %v355_v41 = vadd.f32 %v354_v39, %v353_v37 }
 0x196   :  { %323 = vst.msk [vmem:[%s608_s2] sm:$0x1] %vm322_vm9, %v321_v40  ;;  %v356_v42 = vrot.slane %v355_v41, 4 }
 0x198   :  { %v357_v60 = vadd.f32 %v356_v42, %v355_v41 }
 0x19a   :  { %v358_v43 = vrot.slane %v357_v60, 2 }
 0x19c   :  { %v359_v44 = vadd.f32 %v358_v43, %v357_v60 }
 0x19e   :  { %v360_v45 = vrot.slane %v359_v44, 1 }
 0x1a0   :  { %v361_v47 = vadd.f32 %v360_v45, %v359_v44 }
 0x1a2   :  { %v362_v25 = vadd.f32 %v361_v47, %v324_v46 }
 0x1a4   :  { %363 = vst.msk [vmem:[%s609_s3] sm:$0x1] %vm322_vm9, %v362_v25 }

</bundles_post_ra>
